<compile_context>
chip_gen: v7x
topology: tpu7x:2x2x1
jax: 0.10.0
libtpu: 0.0.40
codegen_flags: <defaults>
</compile_context>

<pallas_src>
import functools
import math

import jax
import jax.numpy as jnp
from jax import lax
from jax.experimental import pallas as pl
from jax.experimental.pallas import tpu as pltpu


def make_pe_table(max_len, d_model, dtype=jnp.float32):
    """Same buffer the PyTorch module builds in __init__ (squeezed to 2-D)."""
    position = jnp.arange(max_len, dtype=jnp.float32)[:, None]                  # (L, 1)
    div_term = jnp.exp(jnp.arange(0, d_model, 2, dtype=jnp.float32)
                       * (-math.log(10000.0) / d_model))                        # (D/2,)
    pe = jnp.zeros((max_len, d_model), dtype=jnp.float32)
    pe = pe.at[:, 0::2].set(jnp.sin(position * div_term))
    pe = pe.at[:, 1::2].set(jnp.cos(position * div_term))
    return pe.astype(dtype)


def _pos_enc_kernel(x_ref, pe_ref, *rest, block_s, batch, pe_resident,
                    input_scale, use_dropout, keep_threshold, keep_scale):
    if use_dropout:
        bits_ref, o_ref = rest
    else:
        (o_ref,) = rest

    x = x_ref[...]                                        # (block_s, B*D), lane-dense
    if pe_resident:
        # Whole PE table is VMEM-resident across the grid (one DMA total);
        # slice this block's rows (start is block_s-aligned, block_s % 8 == 0).
        pe_blk = pe_ref[pl.ds(pl.program_id(0) * block_s, block_s), :]
    else:
        pe_blk = pe_ref[...]                              # (block_s, D) per-step tile
    # Replicate PE across the batch along the lane axis so it matches the [S, B*D]
    # view: (block_s, D) -> (block_s, B*D).  Lane concat is off the VALU path and
    # hidden under the HBM-bound DMA.
    pe_row = jnp.concatenate([pe_blk] * batch, axis=-1) if batch > 1 else pe_blk

    if input_scale != 1.0:                                # optional fused embedding scale
        x = x * jnp.asarray(input_scale, dtype=x.dtype)
    y = x + pe_row                                        # compute stays in x.dtype
                                                          # (bf16-native on v6e/v7x)
    if use_dropout:
        # Inverted dropout (torch.nn.Dropout training semantics): keep w.p. 1-p and
        # scale kept values by 1/(1-p).  Single signed-int threshold compare on the
        # precomputed random words — no shift / int->float convert / extra fmul.
        keep = bits_ref[...] >= jnp.int32(keep_threshold)
        y = jnp.where(keep, y * jnp.asarray(keep_scale, dtype=y.dtype),
                      jnp.zeros_like(y))

    o_ref[...] = y.astype(o_ref.dtype)


_PE_RESIDENT_MAX_BYTES = 4 << 20   # keep the whole PE table resident in VMEM if small
_VMEM_TILE_BUDGET = 8 << 20        # double-buffered live tile budget (fits v5e/v6e/v7x)


def _choose_block_s(seq_len, stream_row_bytes, resident_bytes):
    """Largest sequence tile (multiple of 8 sublanes) whose double-buffered live set
    fits the VMEM budget, capped at 512 rows and so the grid has >= 2 blocks when
    possible (lets the "parallel" axis shard across both v7x TensorCores)."""
    if seq_len <= 8:
        return seq_len
    avail = max(_VMEM_TILE_BUDGET - resident_bytes, 8 * stream_row_bytes)
    bs = min(avail // stream_row_bytes, 512, seq_len)
    if bs >= seq_len:
        bs = (seq_len + 1) // 2
    bs = max(8, (int(bs) // 8) * 8)
    return int(min(bs, seq_len))


def positional_encoding(x, pe_table, *, dropout_p=0.1, training=False,
                        rng_key=None, input_scale=1.0, block_s=None):
    """x: [S, B, D] -> [S, B, D].  Computes dropout(x * input_scale + pe_table[:S]).

    `input_scale` lets the caller fuse the `* sqrt(d_model)` embedding scale that
    immediately precedes pos_encoder() in TransformerModel.forward (default 1.0
    keeps the standalone PositionalEncoding semantics).
    """
    S, B, D = x.shape
    assert pe_table.shape[0] >= S and pe_table.shape[1] == D
    dtype = x.dtype
    itemsize = jnp.dtype(dtype).itemsize

    use_dropout = bool(training) and dropout_p > 0.0
    if use_dropout and dropout_p >= 1.0:
        return jnp.zeros_like(x)

    # Lane-dense view: free contiguous reshape (no HBM copy, unlike a transpose).
    x2 = x.reshape(S, B * D)
    # Native-dtype compute: bf16 inputs stay bf16 on v6e/v7x (half the VMEM tile
    # bytes and HBM traffic); pass f32 on v5e, which has no bf16 VALU.
    pe = pe_table[:S].astype(dtype)

    pe_bytes = S * D * itemsize
    pe_resident = pe_bytes <= _PE_RESIDENT_MAX_BYTES
    stream_row_bytes = 2 * (2 * B * D * itemsize + (B * D * 4 if use_dropout else 0))
    if block_s is None:
        block_s = _choose_block_s(S, stream_row_bytes, pe_bytes if pe_resident else 0)
    block_s = int(block_s)
    assert block_s == S or block_s % 8 == 0, "block_s must equal S or be a multiple of 8"
    n_blocks = pl.cdiv(S, block_s)

    if pe_resident:
        # Constant block index -> the PE table is DMA'd once and stays resident;
        # pad so in-kernel slices of a partial last block stay in bounds.
        s_pad = n_blocks * block_s
        if s_pad != S:
            pe = jnp.pad(pe, ((0, s_pad - S), (0, 0)))
        pe_spec = pl.BlockSpec((s_pad, D), lambda i: (0, 0))
    else:
        pe_spec = pl.BlockSpec((block_s, D), lambda i: (i, 0))

    in_specs = [pl.BlockSpec((block_s, B * D), lambda i: (i, 0)), pe_spec]
    inputs = [x2, pe]

    keep_threshold = 0
    if use_dropout:
        if rng_key is None:
            rng_key = jax.random.PRNGKey(0)
        # Counter-based jax.random words (no correlated consecutive hardware-PRNG
        # seeds; mask is independent of block_s, so results reproduce for a given
        # rng_key regardless of tiling).  Viewed as int32 so the kernel does one
        # signed integer compare: P(bits_i32 >= round(p*2^32) - 2^31) = 1 - p.
        # TODO(synk): on real TPUs the bits could come from in-kernel
        # pltpu.prng_random_bits (saves one x-sized HBM read), but that primitive
        # has no interpret/CPU lowering.
        rbits = jax.random.bits(rng_key, (S, B * D), dtype=jnp.uint32)
        bits = lax.bitcast_convert_type(rbits, jnp.int32)
        keep_threshold = int(round(float(dropout_p) * (1 << 32))) - (1 << 31)
        in_specs.append(pl.BlockSpec((block_s, B * D), lambda i: (i, 0)))
        inputs.append(bits)

    kernel = functools.partial(
        _pos_enc_kernel,
        block_s=block_s, batch=B, pe_resident=pe_resident,
        input_scale=float(input_scale), use_dropout=use_dropout,
        keep_threshold=keep_threshold,
        keep_scale=(1.0 / (1.0 - float(dropout_p))) if use_dropout else 1.0)

    out2 = pl.pallas_call(
        kernel,
        out_shape=jax.ShapeDtypeStruct((S, B * D), dtype),
        grid=(n_blocks,),
        in_specs=in_specs,
        out_specs=pl.BlockSpec((block_s, B * D), lambda i: (i, 0)),
        compiler_params=pltpu.CompilerParams(
            dimension_semantics=("parallel",),     # shard sequence blocks across TCs
            vmem_limit_bytes=32 * 1024 * 1024,     # explicit scoped-VMEM budget
        ),
    )(*inputs)
    return out2.reshape(S, B, D)


if __name__ == "__main__":
    S, B, D = 8, 2, 32          # seq len, batch, d_model (small demo shapes)
    MAX_LEN = 64
    DROPOUT_P = 0.1

    root = jax.random.PRNGKey(0)
    kx, kd = jax.random.split(root)
    x = jax.random.normal(kx, (S, B, D), dtype=jnp.float32)
    pe_table = make_pe_table(MAX_LEN, D)

    # 1) Eval-mode forward (dropout = identity) == PyTorch module in .eval()
    out = jax.block_until_ready(
        positional_encoding(x, pe_table, dropout_p=DROPOUT_P, training=False))
    ref = x + pe_table[:S][:, None, :]
    assert out.shape == (S, B, D)
    assert jnp.allclose(out, ref, atol=1e-6, rtol=1e-6), "eval-mode mismatch"

    # 2) Fused embedding scale (`* sqrt(d_model)` right before pos_encoder in
    #    TransformerModel.forward)
    out_sc = jax.block_until_ready(
        positional_encoding(x, pe_table, dropout_p=DROPOUT_P, training=False,
                            input_scale=math.sqrt(D)))
    ref_sc = x * math.sqrt(D) + pe_table[:S][:, None, :]
    assert jnp.allclose(out_sc, ref_sc, atol=1e-5, rtol=1e-5), "fused-scale mismatch"

    # 3) Training-mode dropout: deterministic given rng_key; check against a
    #    pure-JAX reference built from the same random words.
    out_tr = jax.block_until_ready(
        positional_encoding(x, pe_table, dropout_p=DROPOUT_P, training=True,
                            rng_key=kd))
    rbits = jax.random.bits(kd, (S, B * D), dtype=jnp.uint32)
    bits = lax.bitcast_convert_type(rbits, jnp.int32).reshape(S, B, D)
    thr = int(round(DROPOUT_P * (1 << 32))) - (1 << 31)
    keep = bits >= jnp.int32(thr)
    ref_tr = jnp.where(keep, ref * jnp.float32(1.0 / (1.0 - DROPOUT_P)), 0.0)
    assert out_tr.shape == (S, B, D)
    assert jnp.allclose(out_tr, ref_tr, atol=1e-6, rtol=1e-6), "train-mode mismatch"

    print("KERNEL_OK")
</pallas_src>

<mosaic_0001>
module attributes {stable_mosaic.version = 11 : i64} {
  func.func @_pos_enc_kernel(%arg0: i32, %arg1: memref<8x64xf32, #tpu.memory_space<vmem>>, %arg2: memref<8x32xf32, #tpu.memory_space<vmem>>, %arg3: memref<8x64xf32, #tpu.memory_space<vmem>>) attributes {dimension_semantics = [#tpu.dimension_semantics<parallel>], iteration_bounds = array<i64: 1>, scalar_prefetch = 0 : i64, scratch_operands = 0 : i64, tpu.core_type = #tpu.core_type<tc>, window_params = [{transform_indices = @transform_0, window_bounds = array<i64: 8, 64>}, {pipeline_mode = #tpu.pipeline_mode<synchronous>, transform_indices = @transform_1, window_bounds = array<i64: 8, 32>}, {transform_indices = @transform_2, window_bounds = array<i64: 8, 64>}]} {
    %c0 = arith.constant 0 : index
    %c0_0 = arith.constant 0 : index
    %0 = vector.load %arg1[%c0, %c0_0] : memref<8x64xf32, #tpu.memory_space<vmem>>, vector<8x64xf32>
    %c8_i32 = arith.constant 8 : i32
    %1 = arith.muli %arg0, %c8_i32 : i32
    %2 = arith.index_cast %1 : i32 to index
    %c0_1 = arith.constant 0 : index
    %3 = vector.load %arg2[%2, %c0_1] : memref<8x32xf32, #tpu.memory_space<vmem>>, vector<8x32xf32>
    %4 = tpu.concatenate %3, %3 in 1 : vector<8x32xf32>, vector<8x32xf32> -> vector<8x64xf32>
    %5 = arith.addf %0, %4 : vector<8x64xf32>
    %c0_2 = arith.constant 0 : index
    %c0_3 = arith.constant 0 : index
    %6 = vector.load %arg3[%c0_2, %c0_3] : memref<8x64xf32, #tpu.memory_space<vmem>>, vector<8x64xf32>
    tpu.vector_store %arg3[%c0_2, %c0_3], %5 {strides = array<i32>} : memref<8x64xf32, #tpu.memory_space<vmem>>, vector<8x64xf32>,
    return
  }
  func.func @transform_0(%arg0: i32) -> (i32, i32) {
    %c0_i32 = arith.constant 0 : i32
    %c0_i32_0 = arith.constant 0 : i32
    return %arg0, %c0_i32 : i32, i32
  }
  func.func @transform_1(%arg0: i32) -> (i32, i32) {
    %c0_i32 = arith.constant 0 : i32
    %c0_i32_0 = arith.constant 0 : i32
    %c0_i32_1 = arith.constant 0 : i32
    return %c0_i32, %c0_i32_0 : i32, i32
  }
  func.func @transform_2(%arg0: i32) -> (i32, i32) {
    %c0_i32 = arith.constant 0 : i32
    %c0_i32_0 = arith.constant 0 : i32
    return %arg0, %c0_i32 : i32, i32
  }
}

</mosaic_0001>

<bundles_post_ra>
// kernel: tpu_custom_call.1
= control target key start
LH: loop header
LB: loop body
LE: loop exit
PB: predicated region body
PF: predicated region fallthrough
CT: control target
= control target key end

     0   :  { %7 = vsyncpa [#allocation3], 0  ;;  %s196_s0 = inlined_call_operand.hbm [shape: f32[8,64], index: 0, kind: input, shape index: {}]   ;;  %s197_s1 = inlined_call_operand.hbm [shape: f32[8,32], index: 1, kind: input, shape index: {}]   ;;  %s198_s2 = inlined_call_operand.hbm [shape: f32[8,64], index: 2, kind: output, shape index: {}]  }
   0x1   :  { %8 = vsyncpa [#allocation6], 0 }
   0x2   :  { %9 = vsyncpa [#allocation4], 0  ;;  %s141_s9 = smov [#allocation2]   ;;  %s142_s11 = smov [#allocation5]  }
   0x3   :  { %s16_s10 = sshll.u32 %s141_s9, 4  ;;  %s26_s12 = sshll.u32 %s142_s11, 4  ;;  %s17_s10 = int_to_ptr.vmem [resolvable:$true] %s16_s10  ;;  %s27_s12 = int_to_ptr.vmem [resolvable:$true] %s26_s12 }
   0x4   :  { %s69_s15 = scalar_lea.hbm %s196_s0, 128 }
   0x5   :  { %p70_p0 = scmp.ne.s32.totalorder %s196_s0, %s69_s15  ;;  %p73_p1 = scmp.lt.u32.totalorder %s69_s15, %s196_s0 }
   0x7   :  { %p75_p2 = pnand %p73_p1, %p70_p0 }
   0x9   :  { %78 = shalt.err (!%p75_p2)
}
   0xa   :  { %s79_s20 = scalar_lea.vmem %s17_s10, 128  ;;  %p84_p4 = scmp.lt.s32.totalorder %s17_s10, %s17_s10 }
   0xb   :  { %p80_p3 = scmp.ne.s32.totalorder %s17_s10, %s79_s20  ;;  %p85_p5 = scmp.lt.s32.totalorder %s79_s20, %s79_s20 }
   0xd   :  { %p86_p6 = por %p85_p5, %p84_p4 }
   0xf   :  { %p87_p7 = pnand %p86_p6, %p80_p3 }
  0x11   :  { %90 = shalt.err (!%p87_p7)
}
  0x12   :  { %19 = dma.hbm_to_vmem [thread:$0]  %s196_s0, 128, %s17_s10, [#allocation3]  }
  0x13   :  { %s91_s25 = scalar_lea.hbm %s197_s1, 128 }
  0x14   :  { %p92_p8 = scmp.ne.s32.totalorder %s197_s1, %s91_s25  ;;  %p95_p9 = scmp.lt.u32.totalorder %s91_s25, %s197_s1 }
  0x16   :  { %p97_p10 = pnand %p95_p9, %p92_p8 }
  0x18   :  { %100 = shalt.err (!%p97_p10)
}
  0x19   :  { %s101_s30 = scalar_lea.vmem %s27_s12, 128  ;;  %p106_p12 = scmp.lt.s32.totalorder %s27_s12, %s27_s12 }
  0x1a   :  { %p102_p11 = scmp.ne.s32.totalorder %s27_s12, %s101_s30  ;;  %p107_p13 = scmp.lt.s32.totalorder %s101_s30, %s101_s30 }
  0x1c   :  { %p108_p0 = por %p107_p13, %p106_p12 }
  0x1e   :  { %p109_p1 = pnand %p108_p0, %p102_p11 }
  0x20   :  { %112 = shalt.err (!%p109_p1)
}
  0x21   :  { %29 = dma.hbm_to_vmem [thread:$0]  %s197_s1, 128, %s27_s12, [#allocation6]  }
  0x22   :  { %135 = dma.done.wait [#allocation3], 128  }
  0x23   :  { %136 = vsyncadd [#allocation3], 4294967168 }
  0x24   :  { %137 = dma.done.wait [#allocation6], 128  }
  0x25   :  { %138 = vsyncadd [#allocation6], 4294967168  ;;  %v39_v0 = vld [vmem:[#allocation5] sm:$0xff]  ;;  %s143_s4 = smov 32   ;;  %vm44_vm0 = vcmask 261120   ;;  %v36_v1 = vld [vmem:[#allocation2] sm:$0xff] }
  0x26   :  { %41 = vrot.lane.b32.xlu0 %v39_v0, %s143_s4  ;;  %s144_s5 = smov [#allocation7]   ;;  %vm47_vm1 = vcmask 523264  }
  0x27   :  { %s55_s6 = sshll.u32 %s144_s5, 4  ;;  %s56_s6 = int_to_ptr.vmem [resolvable:$true] %s55_s6 }
  0x28   :  { %s113_s7 = scalar_lea.vmem %s56_s6, 128  ;;  %p118_p3 = scmp.lt.s32.totalorder %s56_s6, %s56_s6 }
  0x29   :  { %p114_p2 = scmp.ne.s32.totalorder %s56_s6, %s113_s7  ;;  %p119_p4 = scmp.lt.s32.totalorder %s113_s7, %s113_s7 }
  0x2b   :  { %p120_p5 = por %p119_p4, %p118_p3 }
  0x2d   :  { %p121_p6 = pnand %p120_p5, %p114_p2 }
  0x98   :  { %v42_v2 = vpop.permute.xlu0 %41 }
  0x99   :  { %v45_v3 = vsel %vm44_vm0, %v39_v0, %v42_v2 }
  0x9a   :  { %v46_v4 = vadd.f32 %v45_v3, %v36_v1 }
  0x9c   :  { %48 = vst.msk [vmem:[#allocation7] sm:$0xff] %vm47_vm1, %v46_v4 }
  0x9d   :  { %124 = shalt.err (!%p121_p6)
}
  0x9e   :  { %s125_s9 = scalar_lea.hbm %s198_s2, 128 }
  0x9f   :  { %p126_p7 = scmp.ne.s32.totalorder %s198_s2, %s125_s9  ;;  %p129_p8 = scmp.lt.u32.totalorder %s125_s9, %s198_s2 }
  0xa1   :  { %p131_p9 = pnand %p129_p8, %p126_p7 }
  0xa3   :  { %134 = shalt.err (!%p131_p9)
}
  0xa4   :  { %58 = dma.vmem_to_hbm [thread:$0]  %s56_s6, 128, %s198_s2, [#allocation4]  }
  0xa5   :  { %139 = dma.done.wait [#allocation4], 128  }
  0xa6   :  { %140 = vsyncadd [#allocation4], 4294967168 }
  0xa7   :  { %62 = vsyncpa [#allocation3], 1 }
  0xa8   :  { %63 = vsyncpa [#allocation6], 1 }
  0xa9   :  { %64 = vsyncpa [#allocation4], 1 }

</bundles_post_ra>
